<compile_context>
chip_gen: v5e
topology: v5e:2x2
jax: 0.10.0
libtpu: 0.0.40
codegen_flags: <defaults>
</compile_context>

<pallas_src>
import functools

import jax
import jax.numpy as jnp
from jax.experimental import pallas as pl
from jax.experimental.pallas import tpu as pltpu

OUT_PAD = 128   # lane-dense padded width for the 5-class linear output
B_PAD = 8       # sublane width: batch rows are padded up to a multiple of 8


# ----------------------------- Pallas kernel --------------------------------
def bilstm_linear_kernel(x2_ref,     # (T*Bp, 2E) bf16  [emb(t) | emb(T-1-t)] per step block
                         w2_ref,     # (2E, 8H)   bf16  [wxf ; wxb] row-stacked
                         bx_ref,     # (1, 8H)    f32   fused biases (b_ih+b_hh, both dirs)
                         whh_ref,    # (2H, 8H)   bf16  block-structured recurrent weights
                         wlin_ref,   # (2H, 128)  bf16  linear weights, zero padded
                         blin_ref,   # (1, 128)   f32
                         out_ref,    # (Bp, 128)  f32
                         xg_s,       # VMEM scratch (T*Bp, 8H) f32
                         *, seq_len):
    T = seq_len
    Bp = out_ref.shape[0]
    H2 = whh_ref.shape[0]      # 2H
    HG = H2                    # per-gate width in the combined layout (= 2H)

    # ---- hoisted, loop-invariant loads --------------------------------------
    whh = whh_ref[...]
    bx = bx_ref[...]

    # ---- single fused input projection (fwd + time-reversed bwd together) ----
    # row block t of xg_s already equals xf[t] + xb[T-1-t] + (b_ih + b_hh).
    xg_s[...] = (jnp.dot(x2_ref[...], w2_ref[...],
                         preferred_element_type=jnp.float32) + bx)

    # combined gate layout (width 8H = 4*HG), sigmoid gates contiguous first:
    #   [ i_f|i_b | f_f|f_b | o_f|o_b | g_f|g_b ]     (each sub-block H wide)
    # state layout (width 2H): h = [h_f | h_b], c = [c_f | c_b]
    h = jnp.zeros((Bp, H2), jnp.float32)
    c = jnp.zeros((Bp, H2), jnp.float32)

    # T is small & static -> fully unrolled recurrence.
    # TODO(synk): for T beyond ~16, switch to lax.fori_loop(..., unroll=k) with
    #             xg_s[pl.ds(t * Bp, Bp), :] and grid-over-T streaming of xg_s.
    for t in range(T):
        xg = xg_s[t * Bp:(t + 1) * Bp, :]                       # aligned (8k,*) tile
        gates = xg + jnp.dot(h.astype(jnp.bfloat16), whh,
                             preferred_element_type=jnp.float32)
        sig = jax.nn.sigmoid(gates[:, :3 * HG])                 # i | f | o  (6H)
        g_g = jnp.tanh(gates[:, 3 * HG:])                       # g          (2H)
        i_g = sig[:, 0 * HG:1 * HG]
        f_g = sig[:, 1 * HG:2 * HG]
        o_g = sig[:, 2 * HG:3 * HG]
        c = f_g * c + i_g * g_g
        h = o_g * jnp.tanh(c)

    # h == concat(final fwd hidden, final bwd hidden) == cat(hidden[-2], hidden[-1])
    out_ref[...] = (jnp.dot(h.astype(jnp.bfloat16), wlin_ref[...],
                            preferred_element_type=jnp.float32)
                    + blin_ref[...])


# ------------------------------- wrapper -------------------------------------
def model_classification_forward(x_ids, packed):
    """x_ids: int32 [B, T].  Returns float32 [B, 5]."""
    B, T = x_ids.shape
    Bp = ((B + B_PAD - 1) // B_PAD) * B_PAD
    x_pad = jnp.pad(x_ids, ((0, Bp - B), (0, 0)))      # pad rows with token 0 (zero emb)

    emb_table = packed["embedding"]                    # (V+1, E) bf16, row 0 == 0
    emb = emb_table[x_pad.T]                           # (T, Bp, E) time-major gather
    # column-stack forward tokens with time-reversed tokens -> one fused matmul
    x2 = jnp.concatenate([emb, emb[::-1]], axis=-1).reshape(T * Bp, -1)   # (T*Bp, 2E) bf16

    H8 = packed["whh"].shape[1]                        # 8H

    vmem = pl.BlockSpec(memory_space=pltpu.MemorySpace.VMEM)
    out = pl.pallas_call(
        functools.partial(bilstm_linear_kernel, seq_len=T),
        out_shape=jax.ShapeDtypeStruct((Bp, OUT_PAD), jnp.float32),
        in_specs=[vmem] * 6,
        out_specs=vmem,
        scratch_shapes=[pltpu.VMEM((T * Bp, H8), jnp.float32)],
    )(x2, packed["w2"], packed["bx"], packed["whh"],
      packed["wlin"], packed["blin"])
    return out[:B, :5]


# --------------------------- parameter construction --------------------------
def init_raw_params(key, vocab_size, hidden_dim, embedding_dim):
    """PyTorch-shaped parameters (nn.LSTM bidirectional + nn.Linear)."""
    H, E = hidden_dim, embedding_dim
    ks = iter(jax.random.split(key, 12))
    bound = 1.0 / jnp.sqrt(jnp.float32(H))

    def u(shape):
        return jax.random.uniform(next(ks), shape, jnp.float32, -bound, bound)

    # Embedding: N(0,1) rows, padding_idx=0 row zeroed (matches nn.Embedding).
    emb = jax.random.normal(next(ks), (vocab_size + 1, E), jnp.float32)
    emb = emb.at[0].set(0.0)

    raw = dict(
        embedding=emb,
        w_ih_f=u((4 * H, E)), w_hh_f=u((4 * H, H)),
        b_ih_f=u((4 * H,)), b_hh_f=u((4 * H,)),
        w_ih_b=u((4 * H, E)), w_hh_b=u((4 * H, H)),
        b_ih_b=u((4 * H,)), b_hh_b=u((4 * H,)),
    )
    lin_bound = 1.0 / jnp.sqrt(jnp.float32(2 * H))
    raw["w_lin"] = jax.random.uniform(next(ks), (5, 2 * H), jnp.float32,
                                      -lin_bound, lin_bound)
    raw["b_lin"] = jax.random.uniform(next(ks), (5,), jnp.float32,
                                      -lin_bound, lin_bound)
    return raw


def pack_params(raw, hidden_dim):
    """Re-layout PyTorch params into the fused/combined kernel layout."""
    H = hidden_dim
    # PyTorch LSTM gate order is (i, f, g, o); combined slot order is (i, f, o, g)
    # so that the three sigmoid gates are contiguous.  slot[k] for k in i,f,g,o:
    SLOT = (0, 1, 3, 2)

    def place_cols(w_dir_T, dir_off):
        # w_dir_T: (rows, 4H) with columns grouped in PyTorch order i,f,g,o.
        # Gate k goes to combined columns [SLOT[k]*2H + dir_off*H : ... + H].
        rows = w_dir_T.shape[0]
        out = jnp.zeros((rows, 8 * H), jnp.float32)
        for k in range(4):
            lo = SLOT[k] * 2 * H + dir_off * H
            out = out.at[:, lo:lo + H].set(w_dir_T[:, k * H:(k + 1) * H])
        return out

    wxf = place_cols(raw["w_ih_f"].T, 0)                       # (E, 8H) fwd cols
    wxb = place_cols(raw["w_ih_b"].T, 1)                       # (E, 8H) bwd cols
    w2 = jnp.concatenate([wxf, wxb], axis=0).astype(jnp.bfloat16)   # (2E, 8H)

    whh = jnp.concatenate([place_cols(raw["w_hh_f"].T, 0),     # rows 0:H  (h_f)
                           place_cols(raw["w_hh_b"].T, 1)],    # rows H:2H (h_b)
                          axis=0).astype(jnp.bfloat16)         # (2H, 8H)

    bf = (raw["b_ih_f"] + raw["b_hh_f"]).reshape(1, 4 * H)
    bb = (raw["b_ih_b"] + raw["b_hh_b"]).reshape(1, 4 * H)
    bx = place_cols(bf, 0) + place_cols(bb, 1)                 # (1, 8H) f32

    wlin = (jnp.zeros((2 * H, OUT_PAD), jnp.float32)
            .at[:, :5].set(raw["w_lin"].T).astype(jnp.bfloat16))
    blin = jnp.zeros((1, OUT_PAD), jnp.float32).at[0, :5].set(raw["b_lin"])

    return dict(embedding=raw["embedding"].astype(jnp.bfloat16),
                w2=w2, bx=bx, whh=whh, wlin=wlin, blin=blin)


if __name__ == "__main__":
    # Small shapes: batch=2, seq=8, vocab=20, hidden_dim=32, embedding_dim=32
    B, T = 2, 8
    VOCAB, H, E = 20, 32, 32

    key = jax.random.PRNGKey(0)
    k_params, k_x = jax.random.split(key)
    raw = init_raw_params(k_params, VOCAB, H, E)
    packed = pack_params(raw, H)

    # Token ids in [0, VOCAB] (0 is padding; padding rows embed to zero and are
    # still processed by the LSTM — same as the reference, which does not pack).
    x = jax.random.randint(k_x, (B, T), 0, VOCAB + 1, dtype=jnp.int32)

    out = model_classification_forward(x, packed)
    out = jax.block_until_ready(out)
    assert out.shape == (B, 5) and out.dtype == jnp.float32
    assert bool(jnp.all(jnp.isfinite(out)))
    print("KERNEL_OK")
</pallas_src>

<mosaic_0001>
module attributes {stable_mosaic.version = 11 : i64} {
  func.func @bilstm_linear_kernel(%arg0: memref<64x64xbf16, #tpu.memory_space<vmem>>, %arg1: memref<64x256xbf16, #tpu.memory_space<vmem>>, %arg2: memref<1x256xf32, #tpu.memory_space<vmem>>, %arg3: memref<64x256xbf16, #tpu.memory_space<vmem>>, %arg4: memref<64x128xbf16, #tpu.memory_space<vmem>>, %arg5: memref<1x128xf32, #tpu.memory_space<vmem>>, %arg6: memref<8x128xf32, #tpu.memory_space<vmem>>, %arg7: memref<64x256xf32, #tpu.memory_space<vmem>>) attributes {dimension_semantics = [], scalar_prefetch = 0 : i64, scratch_operands = 1 : i64, tpu.core_type = #tpu.core_type<tc>} {
    %c0 = arith.constant 0 : index
    %c0_0 = arith.constant 0 : index
    %0 = vector.load %arg3[%c0, %c0_0] : memref<64x256xbf16, #tpu.memory_space<vmem>>, vector<64x256xbf16>
    %c0_1 = arith.constant 0 : index
    %c0_2 = arith.constant 0 : index
    %1 = vector.load %arg2[%c0_1, %c0_2] : memref<1x256xf32, #tpu.memory_space<vmem>>, vector<1x256xf32>
    %c0_3 = arith.constant 0 : index
    %c0_4 = arith.constant 0 : index
    %2 = vector.load %arg0[%c0_3, %c0_4] : memref<64x64xbf16, #tpu.memory_space<vmem>>, vector<64x64xbf16>
    %c0_5 = arith.constant 0 : index
    %c0_6 = arith.constant 0 : index
    %3 = vector.load %arg1[%c0_5, %c0_6] : memref<64x256xbf16, #tpu.memory_space<vmem>>, vector<64x256xbf16>
    %cst = arith.constant dense<0.000000e+00> : vector<64x256xf32>
    %4 = tpu.matmul %2, %3, %cst {dimension_numbers = #tpu.dot_dimension_numbers<[1], [0], [0], [1], [0, 0, 1, 1], [], []>} : vector<64x64xbf16>, vector<64x256xbf16>, vector<64x256xf32> -> vector<64x256xf32>
    %5 = vector.broadcast %1 : vector<1x256xf32> to vector<64x256xf32>
    %6 = arith.addf %4, %5 : vector<64x256xf32>
    %c0_7 = arith.constant 0 : index
    %c0_8 = arith.constant 0 : index
    %7 = vector.load %arg7[%c0_7, %c0_8] : memref<64x256xf32, #tpu.memory_space<vmem>>, vector<64x256xf32>
    tpu.vector_store %arg7[%c0_7, %c0_8], %6 {strides = array<i32>} : memref<64x256xf32, #tpu.memory_space<vmem>>, vector<64x256xf32>,
    %cst_9 = arith.constant 0.000000e+00 : f32
    %8 = vector.broadcast %cst_9 : f32 to vector<8x64xf32>
    %cst_10 = arith.constant 0.000000e+00 : f32
    %9 = vector.broadcast %cst_10 : f32 to vector<8x64xf32>
    %c0_11 = arith.constant 0 : index
    %c0_12 = arith.constant 0 : index
    %10 = vector.load %arg7[%c0_11, %c0_12] : memref<64x256xf32, #tpu.memory_space<vmem>>, vector<8x256xf32>
    %11 = arith.truncf %8 : vector<8x64xf32> to vector<8x64xbf16>
    %cst_13 = arith.constant dense<0.000000e+00> : vector<8x256xf32>
    %12 = tpu.matmul %11, %0, %cst_13 {dimension_numbers = #tpu.dot_dimension_numbers<[1], [0], [0], [1], [0, 0, 1, 1], [], []>} : vector<8x64xbf16>, vector<64x256xbf16>, vector<8x256xf32> -> vector<8x256xf32>
    %13 = arith.addf %10, %12 : vector<8x256xf32>
    %14 = vector.extract_strided_slice %13 {offsets = [0, 0], sizes = [8, 192], strides = [1, 1]} : vector<8x256xf32> to vector<8x192xf32>
    %15 = arith.negf %14 : vector<8x192xf32>
    %16 = math.exp %15 : vector<8x192xf32>
    %cst_14 = arith.constant 1.000000e+00 : f32
    %17 = vector.broadcast %cst_14 : f32 to vector<8x192xf32>
    %18 = arith.addf %17, %16 : vector<8x192xf32>
    %19 = arith.divf %17, %18 : vector<8x192xf32>
    %20 = vector.extract_strided_slice %13 {offsets = [0, 192], sizes = [8, 64], strides = [1, 1]} : vector<8x256xf32> to vector<8x64xf32>
    %21 = math.tanh %20 : vector<8x64xf32>
    %22 = vector.extract_strided_slice %19 {offsets = [0, 0], sizes = [8, 64], strides = [1, 1]} : vector<8x192xf32> to vector<8x64xf32>
    %23 = vector.extract_strided_slice %19 {offsets = [0, 64], sizes = [8, 64], strides = [1, 1]} : vector<8x192xf32> to vector<8x64xf32>
    %24 = vector.extract_strided_slice %19 {offsets = [0, 128], sizes = [8, 64], strides = [1, 1]} : vector<8x192xf32> to vector<8x64xf32>
    %25 = arith.mulf %23, %9 : vector<8x64xf32>
    %26 = arith.mulf %22, %21 : vector<8x64xf32>
    %27 = arith.addf %25, %26 : vector<8x64xf32>
    %28 = math.tanh %27 : vector<8x64xf32>
    %29 = arith.mulf %24, %28 : vector<8x64xf32>
    %c8 = arith.constant 8 : index
    %c0_15 = arith.constant 0 : index
    %30 = vector.load %arg7[%c8, %c0_15] : memref<64x256xf32, #tpu.memory_space<vmem>>, vector<8x256xf32>
    %31 = arith.truncf %29 : vector<8x64xf32> to vector<8x64xbf16>
    %cst_16 = arith.constant dense<0.000000e+00> : vector<8x256xf32>
    %32 = tpu.matmul %31, %0, %cst_16 {dimension_numbers = #tpu.dot_dimension_numbers<[1], [0], [0], [1], [0, 0, 1, 1], [], []>} : vector<8x64xbf16>, vector<64x256xbf16>, vector<8x256xf32> -> vector<8x256xf32>
    %33 = arith.addf %30, %32 : vector<8x256xf32>
    %34 = vector.extract_strided_slice %33 {offsets = [0, 0], sizes = [8, 192], strides = [1, 1]} : vector<8x256xf32> to vector<8x192xf32>
    %35 = arith.negf %34 : vector<8x192xf32>
    %36 = math.exp %35 : vector<8x192xf32>
    %cst_17 = arith.constant 1.000000e+00 : f32
    %37 = vector.broadcast %cst_17 : f32 to vector<8x192xf32>
    %38 = arith.addf %37, %36 : vector<8x192xf32>
    %39 = arith.divf %37, %38 : vector<8x192xf32>
    %40 = vector.extract_strided_slice %33 {offsets = [0, 192], sizes = [8, 64], strides = [1, 1]} : vector<8x256xf32> to vector<8x64xf32>
    %41 = math.tanh %40 : vector<8x64xf32>
    %42 = vector.extract_strided_slice %39 {offsets = [0, 0], sizes = [8, 64], strides = [1, 1]} : vector<8x192xf32> to vector<8x64xf32>
    %43 = vector.extract_strided_slice %39 {offsets = [0, 64], sizes = [8, 64], strides = [1, 1]} : vector<8x192xf32> to vector<8x64xf32>
    %44 = vector.extract_strided_slice %39 {offsets = [0, 128], sizes = [8, 64], strides = [1, 1]} : vector<8x192xf32> to vector<8x64xf32>
    %45 = arith.mulf %43, %27 : vector<8x64xf32>
    %46 = arith.mulf %42, %41 : vector<8x64xf32>
    %47 = arith.addf %45, %46 : vector<8x64xf32>
    %48 = math.tanh %47 : vector<8x64xf32>
    %49 = arith.mulf %44, %48 : vector<8x64xf32>
    %c16 = arith.constant 16 : index
    %c0_18 = arith.constant 0 : index
    %50 = vector.load %arg7[%c16, %c0_18] : memref<64x256xf32, #tpu.memory_space<vmem>>, vector<8x256xf32>
    %51 = arith.truncf %49 : vector<8x64xf32> to vector<8x64xbf16>
    %cst_19 = arith.constant dense<0.000000e+00> : vector<8x256xf32>
    %52 = tpu.matmul %51, %0, %cst_19 {dimension_numbers = #tpu.dot_dimension_numbers<[1], [0], [0], [1], [0, 0, 1, 1], [], []>} : vector<8x64xbf16>, vector<64x256xbf16>, vector<8x256xf32> -> vector<8x256xf32>
    %53 = arith.addf %50, %52 : vector<8x256xf32>
    %54 = vector.extract_strided_slice %53 {offsets = [0, 0], sizes = [8, 192], strides = [1, 1]} : vector<8x256xf32> to vector<8x192xf32>
    %55 = arith.negf %54 : vector<8x192xf32>
    %56 = math.exp %55 : vector<8x192xf32>
    %cst_20 = arith.constant 1.000000e+00 : f32
    %57 = vector.broadcast %cst_20 : f32 to vector<8x192xf32>
    %58 = arith.addf %57, %56 : vector<8x192xf32>
    %59 = arith.divf %57, %58 : vector<8x192xf32>
    %60 = vector.extract_strided_slice %53 {offsets = [0, 192], sizes = [8, 64], strides = [1, 1]} : vector<8x256xf32> to vector<8x64xf32>
    %61 = math.tanh %60 : vector<8x64xf32>
    %62 = vector.extract_strided_slice %59 {offsets = [0, 0], sizes = [8, 64], strides = [1, 1]} : vector<8x192xf32> to vector<8x64xf32>
    %63 = vector.extract_strided_slice %59 {offsets = [0, 64], sizes = [8, 64], strides = [1, 1]} : vector<8x192xf32> to vector<8x64xf32>
    %64 = vector.extract_strided_slice %59 {offsets = [0, 128], sizes = [8, 64], strides = [1, 1]} : vector<8x192xf32> to vector<8x64xf32>
    %65 = arith.mulf %63, %47 : vector<8x64xf32>
    %66 = arith.mulf %62, %61 : vector<8x64xf32>
    %67 = arith.addf %65, %66 : vector<8x64xf32>
    %68 = math.tanh %67 : vector<8x64xf32>
    %69 = arith.mulf %64, %68 : vector<8x64xf32>
    %c24 = arith.constant 24 : index
    %c0_21 = arith.constant 0 : index
    %70 = vector.load %arg7[%c24, %c0_21] : memref<64x256xf32, #tpu.memory_space<vmem>>, vector<8x256xf32>
    %71 = arith.truncf %69 : vector<8x64xf32> to vector<8x64xbf16>
    %cst_22 = arith.constant dense<0.000000e+00> : vector<8x256xf32>
    %72 = tpu.matmul %71, %0, %cst_22 {dimension_numbers = #tpu.dot_dimension_numbers<[1], [0], [0], [1], [0, 0, 1, 1], [], []>} : vector<8x64xbf16>, vector<64x256xbf16>, vector<8x256xf32> -> vector<8x256xf32>
    %73 = arith.addf %70, %72 : vector<8x256xf32>
    %74 = vector.extract_strided_slice %73 {offsets = [0, 0], sizes = [8, 192], strides = [1, 1]} : vector<8x256xf32> to vector<8x192xf32>
    %75 = arith.negf %74 : vector<8x192xf32>
    %76 = math.exp %75 : vector<8x192xf32>
    %cst_23 = arith.constant 1.000000e+00 : f32
    %77 = vector.broadcast %cst_23 : f32 to vector<8x192xf32>
    %78 = arith.addf %77, %76 : vector<8x192xf32>
    %79 = arith.divf %77, %78 : vector<8x192xf32>
    %80 = vector.extract_strided_slice %73 {offsets = [0, 192], sizes = [8, 64], strides = [1, 1]} : vector<8x256xf32> to vector<8x64xf32>
    %81 = math.tanh %80 : vector<8x64xf32>
    %82 = vector.extract_strided_slice %79 {offsets = [0, 0], sizes = [8, 64], strides = [1, 1]} : vector<8x192xf32> to vector<8x64xf32>
    %83 = vector.extract_strided_slice %79 {offsets = [0, 64], sizes = [8, 64], strides = [1, 1]} : vector<8x192xf32> to vector<8x64xf32>
    %84 = vector.extract_strided_slice %79 {offsets = [0, 128], sizes = [8, 64], strides = [1, 1]} : vector<8x192xf32> to vector<8x64xf32>
    %85 = arith.mulf %83, %67 : vector<8x64xf32>
    %86 = arith.mulf %82, %81 : vector<8x64xf32>
    %87 = arith.addf %85, %86 : vector<8x64xf32>
    %88 = math.tanh %87 : vector<8x64xf32>
    %89 = arith.mulf %84, %88 : vector<8x64xf32>
    %c32 = arith.constant 32 : index
    %c0_24 = arith.constant 0 : index
    %90 = vector.load %arg7[%c32, %c0_24] : memref<64x256xf32, #tpu.memory_space<vmem>>, vector<8x256xf32>
    %91 = arith.truncf %89 : vector<8x64xf32> to vector<8x64xbf16>
    %cst_25 = arith.constant dense<0.000000e+00> : vector<8x256xf32>
    %92 = tpu.matmul %91, %0, %cst_25 {dimension_numbers = #tpu.dot_dimension_numbers<[1], [0], [0], [1], [0, 0, 1, 1], [], []>} : vector<8x64xbf16>, vector<64x256xbf16>, vector<8x256xf32> -> vector<8x256xf32>
    %93 = arith.addf %90, %92 : vector<8x256xf32>
    %94 = vector.extract_strided_slice %93 {offsets = [0, 0], sizes = [8, 192], strides = [1, 1]} : vector<8x256xf32> to vector<8x192xf32>
    %95 = arith.negf %94 : vector<8x192xf32>
    %96 = math.exp %95 : vector<8x192xf32>
    %cst_26 = arith.constant 1.000000e+00 : f32
    %97 = vector.broadcast %cst_26 : f32 to vector<8x192xf32>
    %98 = arith.addf %97, %96 : vector<8x192xf32>
    %99 = arith.divf %97, %98 : vector<8x192xf32>
    %100 = vector.extract_strided_slice %93 {offsets = [0, 192], sizes = [8, 64], strides = [1, 1]} : vector<8x256xf32> to vector<8x64xf32>
    %101 = math.tanh %100 : vector<8x64xf32>
    %102 = vector.extract_strided_slice %99 {offsets = [0, 0], sizes = [8, 64], strides = [1, 1]} : vector<8x192xf32> to vector<8x64xf32>
    %103 = vector.extract_strided_slice %99 {offsets = [0, 64], sizes = [8, 64], strides = [1, 1]} : vector<8x192xf32> to vector<8x64xf32>
    %104 = vector.extract_strided_slice %99 {offsets = [0, 128], sizes = [8, 64], strides = [1, 1]} : vector<8x192xf32> to vector<8x64xf32>
    %105 = arith.mulf %103, %87 : vector<8x64xf32>
    %106 = arith.mulf %102, %101 : vector<8x64xf32>
    %107 = arith.addf %105, %106 : vector<8x64xf32>
    %108 = math.tanh %107 : vector<8x64xf32>
    %109 = arith.mulf %104, %108 : vector<8x64xf32>
    %c40 = arith.constant 40 : index
    %c0_27 = arith.constant 0 : index
    %110 = vector.load %arg7[%c40, %c0_27] : memref<64x256xf32, #tpu.memory_space<vmem>>, vector<8x256xf32>
    %111 = arith.truncf %109 : vector<8x64xf32> to vector<8x64xbf16>
    %cst_28 = arith.constant dense<0.000000e+00> : vector<8x256xf32>
    %112 = tpu.matmul %111, %0, %cst_28 {dimension_numbers = #tpu.dot_dimension_numbers<[1], [0], [0], [1], [0, 0, 1, 1], [], []>} : vector<8x64xbf16>, vector<64x256xbf16>, vector<8x256xf32> -> vector<8x256xf32>
    %113 = arith.addf %110, %112 : vector<8x256xf32>
    %114 = vector.extract_strided_slice %113 {offsets = [0, 0], sizes = [8, 192], strides = [1, 1]} : vector<8x256xf32> to vector<8x192xf32>
    %115 = arith.negf %114 : vector<8x192xf32>
    %116 = math.exp %115 : vector<8x192xf32>
    %cst_29 = arith.constant 1.000000e+00 : f32
    %117 = vector.broadcast %cst_29 : f32 to vector<8x192xf32>
    %118 = arith.addf %117, %116 : vector<8x192xf32>
    %119 = arith.divf %117, %118 : vector<8x192xf32>
    %120 = vector.extract_strided_slice %113 {offsets = [0, 192], sizes = [8, 64], strides = [1, 1]} : vector<8x256xf32> to vector<8x64xf32>
    %121 = math.tanh %120 : vector<8x64xf32>
    %122 = vector.extract_strided_slice %119 {offsets = [0, 0], sizes = [8, 64], strides = [1, 1]} : vector<8x192xf32> to vector<8x64xf32>
    %123 = vector.extract_strided_slice %119 {offsets = [0, 64], sizes = [8, 64], strides = [1, 1]} : vector<8x192xf32> to vector<8x64xf32>
    %124 = vector.extract_strided_slice %119 {offsets = [0, 128], sizes = [8, 64], strides = [1, 1]} : vector<8x192xf32> to vector<8x64xf32>
    %125 = arith.mulf %123, %107 : vector<8x64xf32>
    %126 = arith.mulf %122, %121 : vector<8x64xf32>
    %127 = arith.addf %125, %126 : vector<8x64xf32>
    %128 = math.tanh %127 : vector<8x64xf32>
    %129 = arith.mulf %124, %128 : vector<8x64xf32>
    %c48 = arith.constant 48 : index
    %c0_30 = arith.constant 0 : index
    %130 = vector.load %arg7[%c48, %c0_30] : memref<64x256xf32, #tpu.memory_space<vmem>>, vector<8x256xf32>
    %131 = arith.truncf %129 : vector<8x64xf32> to vector<8x64xbf16>
    %cst_31 = arith.constant dense<0.000000e+00> : vector<8x256xf32>
    %132 = tpu.matmul %131, %0, %cst_31 {dimension_numbers = #tpu.dot_dimension_numbers<[1], [0], [0], [1], [0, 0, 1, 1], [], []>} : vector<8x64xbf16>, vector<64x256xbf16>, vector<8x256xf32> -> vector<8x256xf32>
    %133 = arith.addf %130, %132 : vector<8x256xf32>
    %134 = vector.extract_strided_slice %133 {offsets = [0, 0], sizes = [8, 192], strides = [1, 1]} : vector<8x256xf32> to vector<8x192xf32>
    %135 = arith.negf %134 : vector<8x192xf32>
    %136 = math.exp %135 : vector<8x192xf32>
    %cst_32 = arith.constant 1.000000e+00 : f32
    %137 = vector.broadcast %cst_32 : f32 to vector<8x192xf32>
    %138 = arith.addf %137, %136 : vector<8x192xf32>
    %139 = arith.divf %137, %138 : vector<8x192xf32>
    %140 = vector.extract_strided_slice %133 {offsets = [0, 192], sizes = [8, 64], strides = [1, 1]} : vector<8x256xf32> to vector<8x64xf32>
    %141 = math.tanh %140 : vector<8x64xf32>
    %142 = vector.extract_strided_slice %139 {offsets = [0, 0], sizes = [8, 64], strides = [1, 1]} : vector<8x192xf32> to vector<8x64xf32>
    %143 = vector.extract_strided_slice %139 {offsets = [0, 64], sizes = [8, 64], strides = [1, 1]} : vector<8x192xf32> to vector<8x64xf32>
    %144 = vector.extract_strided_slice %139 {offsets = [0, 128], sizes = [8, 64], strides = [1, 1]} : vector<8x192xf32> to vector<8x64xf32>
    %145 = arith.mulf %143, %127 : vector<8x64xf32>
    %146 = arith.mulf %142, %141 : vector<8x64xf32>
    %147 = arith.addf %145, %146 : vector<8x64xf32>
    %148 = math.tanh %147 : vector<8x64xf32>
    %149 = arith.mulf %144, %148 : vector<8x64xf32>
    %c56 = arith.constant 56 : index
    %c0_33 = arith.constant 0 : index
    %150 = vector.load %arg7[%c56, %c0_33] : memref<64x256xf32, #tpu.memory_space<vmem>>, vector<8x256xf32>
    %151 = arith.truncf %149 : vector<8x64xf32> to vector<8x64xbf16>
    %cst_34 = arith.constant dense<0.000000e+00> : vector<8x256xf32>
    %152 = tpu.matmul %151, %0, %cst_34 {dimension_numbers = #tpu.dot_dimension_numbers<[1], [0], [0], [1], [0, 0, 1, 1], [], []>} : vector<8x64xbf16>, vector<64x256xbf16>, vector<8x256xf32> -> vector<8x256xf32>
    %153 = arith.addf %150, %152 : vector<8x256xf32>
    %154 = vector.extract_strided_slice %153 {offsets = [0, 0], sizes = [8, 192], strides = [1, 1]} : vector<8x256xf32> to vector<8x192xf32>
    %155 = arith.negf %154 : vector<8x192xf32>
    %156 = math.exp %155 : vector<8x192xf32>
    %cst_35 = arith.constant 1.000000e+00 : f32
    %157 = vector.broadcast %cst_35 : f32 to vector<8x192xf32>
    %158 = arith.addf %157, %156 : vector<8x192xf32>
    %159 = arith.divf %157, %158 : vector<8x192xf32>
    %160 = vector.extract_strided_slice %153 {offsets = [0, 192], sizes = [8, 64], strides = [1, 1]} : vector<8x256xf32> to vector<8x64xf32>
    %161 = math.tanh %160 : vector<8x64xf32>
    %162 = vector.extract_strided_slice %159 {offsets = [0, 0], sizes = [8, 64], strides = [1, 1]} : vector<8x192xf32> to vector<8x64xf32>
    %163 = vector.extract_strided_slice %159 {offsets = [0, 64], sizes = [8, 64], strides = [1, 1]} : vector<8x192xf32> to vector<8x64xf32>
    %164 = vector.extract_strided_slice %159 {offsets = [0, 128], sizes = [8, 64], strides = [1, 1]} : vector<8x192xf32> to vector<8x64xf32>
    %165 = arith.mulf %163, %147 : vector<8x64xf32>
    %166 = arith.mulf %162, %161 : vector<8x64xf32>
    %167 = arith.addf %165, %166 : vector<8x64xf32>
    %168 = math.tanh %167 : vector<8x64xf32>
    %169 = arith.mulf %164, %168 : vector<8x64xf32>
    %170 = arith.truncf %169 : vector<8x64xf32> to vector<8x64xbf16>
    %c0_36 = arith.constant 0 : index
    %c0_37 = arith.constant 0 : index
    %171 = vector.load %arg4[%c0_36, %c0_37] : memref<64x128xbf16, #tpu.memory_space<vmem>>, vector<64x128xbf16>
    %cst_38 = arith.constant dense<0.000000e+00> : vector<8x128xf32>
    %172 = tpu.matmul %170, %171, %cst_38 {dimension_numbers = #tpu.dot_dimension_numbers<[1], [0], [0], [1], [0, 0, 1, 1], [], []>} : vector<8x64xbf16>, vector<64x128xbf16>, vector<8x128xf32> -> vector<8x128xf32>
    %c0_39 = arith.constant 0 : index
    %c0_40 = arith.constant 0 : index
    %173 = vector.load %arg5[%c0_39, %c0_40] : memref<1x128xf32, #tpu.memory_space<vmem>>, vector<1x128xf32>
    %174 = vector.broadcast %173 : vector<1x128xf32> to vector<8x128xf32>
    %175 = arith.addf %172, %174 : vector<8x128xf32>
    %c0_41 = arith.constant 0 : index
    %c0_42 = arith.constant 0 : index
    %176 = vector.load %arg6[%c0_41, %c0_42] : memref<8x128xf32, #tpu.memory_space<vmem>>, vector<8x128xf32>
    tpu.vector_store %arg6[%c0_41, %c0_42], %175 {strides = array<i32>} : memref<8x128xf32, #tpu.memory_space<vmem>>, vector<8x128xf32>,
    return
  }
}

</mosaic_0001>

<bundles_post_ra>
// kernel: tpu_custom_call.1
= control target key start
LH: loop header
LB: loop body
LE: loop exit
PB: predicated region body
PF: predicated region fallthrough
CT: control target
= control target key end

     0   :  { %11 = vsyncpa [#allocation4], 0  ;;  %s1785_s0 = inlined_call_operand.hbm [shape: bf16[64,64], index: 0, kind: input, shape index: {}]   ;;  %s1786_s1 = inlined_call_operand.hbm [shape: bf16[64,256], index: 1, kind: input, shape index: {}]   ;;  %s1787_s2 = inlined_call_operand.hbm [shape: f32[1,256], index: 2, kind: input, shape index: {}]   ;;  %s1788_s3 = inlined_call_operand.hbm [shape: bf16[64,256], index: 3, kind: input, shape index: {}]   ;;  %s1789_s4 = inlined_call_operand.hbm [shape: bf16[64,128], index: 4, kind: input, shape index: {}]   ;;  %s1790_s5 = inlined_call_operand.vmem [shape: f32[1,128], index: 5, kind: input, shape index: {}]   ;;  %s1791_s6 = inlined_call_operand.hbm [shape: f32[8,128], index: 6, kind: output, shape index: {}]  }
   0x1   :  { %12 = vsyncpa [#allocation7], 0 }
   0x2   :  { %13 = vsyncpa [#allocation10], 0  ;;  %s32_s23 = sshll.u32 %s1786_s1, 4  ;;  %s33_s23 = int_to_ptr.hbm [resolvable:$true] %s32_s23 }
   0x3   :  { %14 = vsyncpa [#allocation5], 0  ;;  %s1529_s24 = smov [#allocation6]   ;;  %s56_s28 = sshll.u32 %s1788_s3, 4  ;;  %s57_s28 = int_to_ptr.hbm [resolvable:$true] %s56_s28 }
   0x4   :  { %s34_s25 = sshll.u32 %s1529_s24, 4  ;;  %s1530_s29 = smov 128   ;;  %s35_s25 = int_to_ptr.vmem [resolvable:$true] %s34_s25 }
   0x5   :  { %s1531_s30 = smov 8   ;;  %s1532_s7 = smov [#allocation9]  }
   0x6   :  { %40 = dma.hbm_to_vmem [thread:$0]  %s33_s23, 1024, %s35_s25, [#allocation7], %s1530_s29, %s1530_s29, %s1531_s30  }
   0x7   :  { %s58_s8 = sshll.u32 %s1532_s7, 4  ;;  %s19_s11 = sshll.u32 %s1785_s0, 4  ;;  %s59_s8 = int_to_ptr.vmem [resolvable:$true] %s58_s8  ;;  %s20_s11 = int_to_ptr.hbm [resolvable:$true] %s19_s11 }
   0x8   :  { %64 = dma.hbm_to_vmem [thread:$0]  %s57_s28, 1024, %s59_s8, [#allocation10], %s1530_s29, %s1530_s29, %s1531_s30  }
   0x9   :  { %s1533_s1 = smov [#allocation3]   ;;  %s46_s3 = sshll.u32 %s1787_s2, 4  ;;  %s47_s3 = int_to_ptr.hbm [resolvable:$true] %s46_s3 }
   0xa   :  { %s21_s12 = sshll.u32 %s1533_s1, 4  ;;  %s1534_s15 = smov 64   ;;  %s22_s12 = int_to_ptr.vmem [resolvable:$true] %s21_s12 }
   0xb   :  { %s1535_s16 = smov 4   ;;  %s1536_s17 = smov [#allocation8]  }
   0xc   :  { %27 = dma.hbm_to_vmem [thread:$0]  %s20_s11, 512, %s22_s12, [#allocation4], %s1534_s15, %s1534_s15, %s1535_s16  }
   0xd   :  { %s48_s18 = sshll.u32 %s1536_s17, 4  ;;  %s69_s20 = sshll.u32 %s1789_s4, 4  ;;  %s49_s18 = int_to_ptr.vmem [resolvable:$true] %s48_s18  ;;  %s70_s20 = int_to_ptr.hbm [resolvable:$true] %s69_s20 }
   0xe   :  { %51 = dma.hbm_to_vmem [thread:$0]  %s47_s3, 32, %s49_s18, [#allocation7]  }
   0xf   :  { %s1537_s21 = smov [#allocation11]  }
  0x10   :  { %s71_s22 = sshll.u32 %s1537_s21, 4  ;;  %s72_s22 = int_to_ptr.vmem [resolvable:$true] %s71_s22 }
  0x11   :  { %77 = dma.hbm_to_vmem [thread:$0]  %s70_s20, 512, %s72_s22, [#allocation10], %s1534_s15, %s1534_s15, %s1535_s16  }
  0x12   :  { %1521 = dma.done.wait [#allocation4], 512  }
  0x13   :  { %1522 = vsyncadd [#allocation4], 4294966784 }
  0x14   :  { %1523 = dma.done.wait [#allocation7], 1056  }
  0x15   :  { %1524 = vsyncadd [#allocation7], 4294966240 }
  0x16   :  { %1525 = dma.done.wait [#allocation10], 1536  }
  0x17   :  { %1526 = vsyncadd [#allocation10], 4294965760  ;;  %v1263_v0 = vld [vmem:[#allocation6 + $0x34] sm:$0xf]  ;;  %v1154_v1 = vld [vmem:[#allocation6 + $0x38] sm:$0xf0] }
  0x18   :  { %v1251_v2 = vld [vmem:[#allocation9 + $0x34] sm:$0xf]  ;;  %v1157_v3 = vor.u32 %v1263_v0, %v1154_v1  ;;  %v1194_v4 = vld [vmem:[#allocation9 + $0x38] sm:$0xf0]  ;;  %v1261_v5 = vld [vmem:[#allocation6 + $0x24] sm:$0xf] }
  0x19   :  { %v1146_v6 = vld [vmem:[#allocation6 + $0x28] sm:$0xf0]  ;;  %v1594_v7 = vor.u32 %v1251_v2, %v1194_v4  ;;  %v1249_v8 = vld [vmem:[#allocation9 + $0x24] sm:$0xf]  ;;  %v1259_v12 = vld [vmem:[#allocation6 + $0x14] sm:$0xf] }
  0x1a   :  { %v1186_v9 = vld [vmem:[#allocation9 + $0x28] sm:$0xf0]  ;;  %237 = vmatpush.bf16.msra.mxu1 %v1157_v3  ;;  %v1149_v10 = vor.u32 %v1261_v5, %v1146_v6  ;;  %v1138_v13 = vld [vmem:[#allocation6 + $0x18] sm:$0xf0]  ;;  %v1247_v14 = vld [vmem:[#allocation9 + $0x14] sm:$0xf] }
  0x1b   :  { %340 = vmatpush.bf16.msra.mxu3 %v1594_v7  ;;  %v1597_v11 = vor.u32 %v1249_v8, %v1186_v9  ;;  %v1178_v15 = vld [vmem:[#allocation9 + $0x18] sm:$0xf0]  ;;  %v1192_v16 = vld [vmem:[#allocation9 + $0x30] sm:$0xf]  ;;  %v1252_v17 = vld [vmem:[#allocation9 + $0x34] sm:$0xf0]  ;;  %v1141_v20 = vor.u32 %v1259_v12, %v1138_v13 }
  0x1c   :  { %v1152_v18 = vld [vmem:[#allocation6 + $0x30] sm:$0xf]  ;;  %v1264_v19 = vld [vmem:[#allocation6 + $0x34] sm:$0xf0]  ;;  %v1599_v21 = vor.u32 %v1252_v17, %v1192_v16  ;;  %v1184_v23 = vld [vmem:[#allocation9 + $0x20] sm:$0xf]  ;;  %v1602_v26 = vor.u32 %v1247_v14, %v1178_v15 }
  0x1d   :  { %v1153_v22 = vor.u32 %v1264_v19, %v1152_v18  ;;  %v1250_v24 = vld [vmem:[#allocation9 + $0x24] sm:$0xf0]  ;;  %v1144_v25 = vld [vmem:[#allocation6 + $0x20] sm:$0xf]  ;;  %v1257_v27 = vld [vmem:[#allocation6 + $0x4] sm:$0xf] }
  0x1e   :  { %238 = vmatpush.bf16.msra.mxu1 %v1149_v10  ;;  %v1130_v28 = vld [vmem:[#allocation6 + $0x8] sm:$0xf0]  ;;  %v1262_v29 = vld [vmem:[#allocation6 + $0x24] sm:$0xf0]  ;;  %327 = vmatpush.bf16.msra.mxu2 %v1599_v21  ;;  %v1605_v32 = vor.u32 %v1250_v24, %v1184_v23  ;;  %v1176_v34 = vld [vmem:[#allocation9 + $0x10] sm:$0xf] }
  0x1f   :  { %341 = vmatpush.bf16.msra.mxu3 %v1597_v11  ;;  %v1245_v30 = vld [vmem:[#allocation9 + $0x4] sm:$0xf]  ;;  %v1170_v31 = vld [vmem:[#allocation9 + $0x8] sm:$0xf0]  ;;  %208 = vmatpush.bf16.msra.mxu0 %v1153_v22  ;;  %v1145_v33 = vor.u32 %v1262_v29, %v1144_v25  ;;  %v1248_v35 = vld [vmem:[#allocation9 + $0x14] sm:$0xf0]  ;;  %v1133_v38 = vor.u32 %v1257_v27, %v1130_v28 }
  0x20   :  { %v1136_v36 = vld [vmem:[#allocation6 + $0x10] sm:$0xf]  ;;  %v1260_v37 = vld [vmem:[#allocation6 + $0x14] sm:$0xf0]  ;;  %v1608_v39 = vor.u32 %v1245_v30, %v1170_v31  ;;  %v1253_v40 = vld [vmem:[#allocation3] sm:$0xff]  ;;  %v1611_v41 = vor.u32 %v1248_v35, %v1176_v34  ;;  %vm191_vm0 = vcmask 523264  }
  0x21   :  { %v1137_v42 = vor.u32 %v1260_v37, %v1136_v36  ;;  %v1168_v43 = vld [vmem:[#allocation9] sm:$0xf]  ;;  %v1246_v44 = vld [vmem:[#allocation9 + $0x4] sm:$0xf0]  ;;  %v1538_v49 = vmov 0   ;;  %s1539_s23 = smov [#allocation12]  }
  0x22   :  { %239 = vmatpush.bf16.msra.mxu1 %v1141_v20  ;;  %328 = vmatpush.bf16.msra.mxu2 %v1605_v32  ;;  %v1128_v45 = vld [vmem:[#allocation6] sm:$0xf]  ;;  %v1258_v46 = vld [vmem:[#allocation6 + $0x4] sm:$0xf0]  ;;  %v1616_v47 = vor.u32 %v1246_v44, %v1168_v43  ;;  %s1096_s24 = sshll.u32 %s1539_s23, 4  ;;  %s1098_s27 = sshll.u32 %s1791_s6, 4  ;;  %s1097_s24 = int_to_ptr.vmem [resolvable:$true] %s1096_s24  ;;  %s1099_s27 = int_to_ptr.hbm [resolvable:$true] %s1098_s27 }
  0x23   :  { %342 = vmatpush.bf16.msra.mxu3 %v1602_v26  ;;  %209 = vmatpush.bf16.msra.mxu0 %v1145_v33  ;;  %v1129_v48 = vor.u32 %v1258_v46, %v1128_v45  ;;  %v109_v50 = vld [vmem:[#allocation8] sm:$0x3] }
  0x24   :  { %v1652_v51 = vperm.slane %v109_v50, 1  ;;  %v1656_v60 = vperm.slane %v109_v50, 0 }
  0x26   :  { %240 = vmatpush.bf16.msra.mxu1 %v1133_v38  ;;  %329 = vmatpush.bf16.msra.mxu2 %v1611_v41 }
  0x27   :  { %343 = vmatpush.bf16.msra.mxu3 %v1608_v39  ;;  %210 = vmatpush.bf16.msra.mxu0 %v1137_v42 }
  0x29   :  { %1162 = vmatmul.msk.bf16.vlgmr.msra.gmra.mxu1 %vm191_vm0, %v1253_v40 }
  0x2a   :  { %700 = vmatpush.bf16.msrb.mxu1 %v1594_v7  ;;  %344 = vmatmul.bf16.vlgmr.msra.gmra.mxu3 %v1538_v49 }
  0x2b   :  { %430 = vmatpush.bf16.msrb.mxu3 %v1594_v7  ;;  %330 = vmatpush.bf16.msra.mxu2 %v1616_v47 }
  0x2c   :  { %211 = vmatpush.bf16.msra.mxu0 %v1129_v48 }
  0x2e   :  { %701 = vmatpush.bf16.msrb.mxu1 %v1597_v11  ;;  %331 = vmatmul.bf16.vlgmr.msra.gmra.mxu2 %v1538_v49 }
  0x2f   :  { %417 = vmatpush.bf16.msrb.mxu2 %v1599_v21  ;;  %431 = vmatpush.bf16.msrb.mxu3 %v1597_v11 }
  0x30   :  { %687 = vmatpush.bf16.msrb.mxu0 %v1599_v21 }
  0x31   :  { %1158 = vmatmul.msk.bf16.vlgmr.msra.gmra.mxu0 %vm191_vm0, %v1253_v40 }
  0x32   :  { %702 = vmatpush.bf16.msrb.mxu1 %v1602_v26 }
  0x33   :  { %418 = vmatpush.bf16.msrb.mxu2 %v1605_v32  ;;  %432 = vmatpush.bf16.msrb.mxu3 %v1602_v26 }
  0x34   :  { %688 = vmatpush.bf16.msrb.mxu0 %v1605_v32 }
  0x36   :  { %703 = vmatpush.bf16.msrb.mxu1 %v1608_v39 }
  0x37   :  { %419 = vmatpush.bf16.msrb.mxu2 %v1611_v41  ;;  %433 = vmatpush.bf16.msrb.mxu3 %v1608_v39 }
  0x38   :  { %689 = vmatpush.bf16.msrb.mxu0 %v1611_v41 }
  0x3a   :  { %880 = vmatpush.bf16.msra.mxu1 %v1594_v7 }
  0x3b   :  { %520 = vmatpush.bf16.msra.mxu3 %v1594_v7  ;;  %420 = vmatpush.bf16.msrb.mxu2 %v1616_v47 }
  0x3c   :  { %690 = vmatpush.bf16.msrb.mxu0 %v1616_v47 }
  0x3e   :  { %881 = vmatpush.bf16.msra.mxu1 %v1597_v11 }
  0x3f   :  { %507 = vmatpush.bf16.msra.mxu2 %v1599_v21  ;;  %521 = vmatpush.bf16.msra.mxu3 %v1597_v11 }
  0x40   :  { %867 = vmatpush.bf16.msra.mxu0 %v1599_v21 }
  0x42   :  { %882 = vmatpush.bf16.msra.mxu1 %v1602_v26 }
  0x43   :  { %508 = vmatpush.bf16.msra.mxu2 %v1605_v32  ;;  %522 = vmatpush.bf16.msra.mxu3 %v1602_v26 }
  0x44   :  { %868 = vmatpush.bf16.msra.mxu0 %v1605_v32 }
  0x46   :  { %883 = vmatpush.bf16.msra.mxu1 %v1608_v39 }
  0x47   :  { %509 = vmatpush.bf16.msra.mxu2 %v1611_v41  ;;  %523 = vmatpush.bf16.msra.mxu3 %v1608_v39 }
  0x48   :  { %869 = vmatpush.bf16.msra.mxu0 %v1611_v41 }
  0x4b   :  { %510 = vmatpush.bf16.msra.mxu2 %v1616_v47 }
  0x4c   :  { %870 = vmatpush.bf16.msra.mxu0 %v1616_v47 }
  0xa6   :  { %v242_v52 = vpop.f32.mrf.mxu1 }
  0xa7   :  { %v243_v53 = vadd.f32 %v242_v52, %v1652_v51 }
  0xad   :  { %v345_v54 = vpop.f32.mrf.mxu3 }
  0xae   :  { %v350_v55 = vadd.f32 %v345_v54, %v243_v53  ;;  %v213_v61 = vpop.f32.mrf.mxu0  ;;  %v244_v42 = vpop.f32.mrf.mxu1 }
  0xaf   :  { %v214_v62 = vadd.f32 %v213_v61, %v1656_v60  ;;  %v245_v43 = vadd.f32 %v244_v42, %v1652_v51 }
  0xb0   :  { %1281 = vtanh.f32 %v350_v55  ;;  %v1199_v22 = vmul.f32 -1.442695, %v350_v55 }
  0xb1   :  { %v332_v56 = vpop.f32.mrf.mxu2 }
  0xb2   :  { %v349_v63 = vadd.f32 %v332_v56, %v214_v62 }
  0xb4   :  { %v1198_v0 = vmul.f32 -1.442695, %v349_v63 }
  0xb5   :  { %v347_v57 = vpop.f32.mrf.mxu3 }
  0xb6   :  { %v1282_v58 = vpop.eup %1281  ;;  %1283 = vpow2.f32 %v1198_v0  ;;  %v215_v52 = vpop.f32.mrf.mxu0 }
  0xb7   :  { %392 = vrot.lane.b32.xlu0 %v1282_v58, %s1534_s15  ;;  %v216_v53 = vadd.f32 %v215_v52, %v1656_v60 }
  0xb9   :  { %v334_v59 = vpop.f32.mrf.mxu2 }
  0xbc   :  { %v1284_v1 = vpop.eup %1283 }
  0xbd   :  { %v357_v2 = vadd.f32 1.0, %v1284_v1 }
  0xbf   :  { %1285 = vrcp.f32 %v357_v2  ;;  %vm364_vm1 = vweird.f32 %v357_v2  ;;  %v370_v8 = vand.u32 2147483648, %v357_v2  ;;  %v368_v10 = vand.u32 2147483647, %v357_v2 }
  0xc1   :  { %v371_v12 = vor.u32 1.1754944e-38, %v370_v8  ;;  %vm369_vm4 = vcmp.eq.f32.partialorder %v368_v10, 8.507059e+37 }
  0xc5   :  { %v1286_v3 = vpop.eup %1285 }
  0xc6   :  { %v360_v4 = vmul.f32 %v1286_v3, %v357_v2  ;;  %vm365_vm2 = vweird.f32 %v1286_v3 }
  0xc7   :  { %vm366_vm3 = vmor %vm364_vm1, %vm365_vm2 }
  0xc8   :  { %v361_v5 = vsub.f32 1.0, %v360_v4 }
  0xca   :  { %v362_v6 = vmul.f32 %v1286_v3, %v361_v5 }
  0xcc   :  { %v363_v9 = vadd.f32 %v1286_v3, %v362_v6 }
  0xce   :  { %v367_v13 = vsel %vm366_vm3, %v1286_v3, %v363_v9 }
  0xcf   :  { %v372_v14 = vsel %vm369_vm4, %v371_v12, %v367_v13 }
  0xd0   :  { %v390_v17 = vmul.f32 0.0, %v372_v14 }
 0x129   :  { %v393_v15 = vpop.permute.xlu0 %392 }
 0x12a   :  { %v395_v16 = vmul.f32 %v393_v15, %v372_v14 }
 0x12c   :  { %397 = vrot.lane.b32.xlu0 %v395_v16, %s1534_s15  ;;  %v1254_v16 = vld [vmem:[#allocation3 + $0x8] sm:$0xff] }
 0x12d   :  { %1163 = vmatmul.msk.bf16.gmra.mxu1 %vm191_vm0, %v1254_v16  ;;  %1159 = vmatmul.msk.bf16.gmra.mxu0 %vm191_vm0, %v1254_v16 }
 0x19e   :  { %v398_v18 = vpop.permute.xlu0 %397 }
 0x19f   :  { %v1660_v19 = vadd.f32 %v398_v18, %v390_v17 }
 0x1a1   :  { %1287 = vtanh.f32 %v1660_v19 }
 0x1a2   :  { %1289 = vpow2.f32 %v1199_v22 }
 0x1a7   :  { %v1288_v20 = vpop.eup %1287 }
 0x1a8   :  { %403 = vrot.lane.b32.xlu1 %v1288_v20, %s1534_s15  ;;  %v1290_v23 = vpop.eup %1289 }
 0x1a9   :  { %v358_v24 = vadd.f32 1.0, %v1290_v23 }
 0x1ab   :  { %1291 = vrcp.f32 %v358_v24  ;;  %v385_v31 = vand.u32 2147483648, %v358_v24  ;;  %vm379_vm6 = vweird.f32 %v358_v24  ;;  %v383_v33 = vand.u32 2147483647, %v358_v24 }
 0x1ad   :  { %v386_v35 = vor.u32 1.1754944e-38, %v385_v31  ;;  %vm384_vm8 = vcmp.eq.f32.partialorder %v383_v33, 8.507059e+37  ;;  %v247_v33 = vpop.f32.mrf.mxu1 }
 0x1b1   :  { %v1292_v25 = vpop.eup %1291 }
 0x1b2   :  { %v375_v27 = vmul.f32 %v1292_v25, %v358_v24  ;;  %vm380_vm5 = vweird.f32 %v1292_v25 }
 0x1b3   :  { %vm381_vm7 = vmor %vm379_vm6, %vm380_vm5 }
 0x1b4   :  { %v376_v28 = vsub.f32 1.0, %v375_v27 }
 0x1b6   :  { %v377_v29 = vmul.f32 %v1292_v25, %v376_v28 }
 0x1b8   :  { %v378_v30 = vadd.f32 %v1292_v25, %v377_v29 }
 0x1ba   :  { %v382_v34 = vsel %vm381_vm7, %v1292_v25, %v378_v30 }
 0x1bb   :  { %v387_v37 = vsel %vm384_vm8, %v386_v35, %v382_v34  ;;  %v248_v34 = vadd.f32 %v247_v33, %v1652_v51 }
 0x21a   :  { %v404_v36 = vpop.permute.xlu1 %403 }
 0x21b   :  { %v406_v38 = vmul.f32 %v404_v36, %v387_v37 }
 0x21d   :  { %v409_v40 = vpack.c.bf16 %v406_v38, %v406_v38 }
 0x21f   :  { %1200 = vmatmul.msk.bf16.vlgmr.msrb.gmra.mxu2 %vm191_vm0, %v409_v40  ;;  %1201 = vmatmul.msk.bf16.vlgmr.msrb.gmra.mxu3 %vm191_vm0, %v409_v40 }
 0x220   :  { %610 = vmatpush.bf16.msrb.mxu3 %v1594_v7  ;;  %597 = vmatpush.bf16.msrb.mxu2 %v1599_v21 }
 0x224   :  { %611 = vmatpush.bf16.msrb.mxu3 %v1597_v11  ;;  %598 = vmatpush.bf16.msrb.mxu2 %v1605_v32 }
 0x228   :  { %612 = vmatpush.bf16.msrb.mxu3 %v1602_v26  ;;  %599 = vmatpush.bf16.msrb.mxu2 %v1611_v41 }
 0x22c   :  { %613 = vmatpush.bf16.msrb.mxu3 %v1608_v39  ;;  %600 = vmatpush.bf16.msrb.mxu2 %v1616_v47 }
 0x2a2   :  { %v422_v44 = vpop.f32.mrf.mxu2  ;;  %v435_v45 = vpop.f32.mrf.mxu3 }
 0x2a3   :  { %v440_v46 = vadd.f32 %v435_v45, %v245_v43  ;;  %v439_v54 = vadd.f32 %v422_v44, %v216_v53  ;;  %v218_v43 = vpop.f32.mrf.mxu0 }
 0x2a4   :  { %v219_v44 = vadd.f32 %v218_v43, %v1656_v60 }
 0x2a5   :  { %1293 = vtanh.f32 %v440_v46  ;;  %v1202_v55 = vmul.f32 -1.442695, %v439_v54  ;;  %v1203_v13 = vmul.f32 -1.442695, %v440_v46 }
 0x2a7   :  { %1295 = vpow2.f32 %v1202_v55 }
 0x2aa   :  { %v424_v48 = vpop.f32.mrf.mxu2  ;;  %v437_v49 = vpop.f32.mrf.mxu3 }
 0x2ab   :  { %v1294_v50 = vpop.eup %1293 }
 0x2ac   :  { %482 = vrot.lane.b32.xlu1 %v1294_v50, %s1534_s15 }
 0x2ad   :  { %v1296_v56 = vpop.eup %1295 }
 0x2ae   :  { %v447_v57 = vadd.f32 1.0, %v1296_v56 }
 0x2b0   :  { %1297 = vrcp.f32 %v447_v57  ;;  %v460_v0 = vand.u32 2147483648, %v447_v57  ;;  %vm454_vm10 = vweird.f32 %v447_v57  ;;  %v458_v1 = vand.u32 2147483647, %v447_v57 }
 0x2b2   :  { %v461_v3 = vor.u32 1.1754944e-38, %v460_v0  ;;  %vm459_vm12 = vcmp.eq.f32.partialorder %v458_v1, 8.507059e+37 }
 0x2b6   :  { %v1298_v58 = vpop.eup %1297 }
 0x2b7   :  { %v450_v59 = vmul.f32 %v1298_v58, %v447_v57  ;;  %vm455_vm9 = vweird.f32 %v1298_v58 }
 0x2b8   :  { %vm456_vm11 = vmor %vm454_vm10, %vm455_vm9 }
 0x2b9   :  { %v451_v61 = vsub.f32 1.0, %v450_v59 }
 0x2bb   :  { %v452_v62 = vmul.f32 %v1298_v58, %v451_v61 }
 0x2bd   :  { %v453_v63 = vadd.f32 %v1298_v58, %v452_v62 }
 0x2bf   :  { %v457_v2 = vsel %vm456_vm11, %v1298_v58, %v453_v63 }
 0x2c0   :  { %v462_v5 = vsel %vm459_vm12, %v461_v3, %v457_v2 }
 0x2c1   :  { %v480_v8 = vmul.f32 %v462_v5, %v1660_v19 }
 0x31e   :  { %v483_v4 = vpop.permute.xlu1 %482 }
 0x31f   :  { %v485_v6 = vmul.f32 %v483_v4, %v462_v5 }
 0x321   :  { %487 = vrot.lane.b32.xlu2 %v485_v6, %s1534_s15 }
 0x37b   :  { %v488_v9 = vpop.permute.xlu2 %487 }
 0x37c   :  { %v1679_v10 = vadd.f32 %v488_v9, %v480_v8 }
 0x37e   :  { %1299 = vtanh.f32 %v1679_v10 }
 0x37f   :  { %1301 = vpow2.f32 %v1203_v13 }
 0x384   :  { %v1300_v12 = vpop.eup %1299 }
 0x385   :  { %493 = vrot.lane.b32.xlu2 %v1300_v12, %s1534_s15  ;;  %v1302_v14 = vpop.eup %1301 }
 0x386   :  { %v448_v15 = vadd.f32 1.0, %v1302_v14 }
 0x388   :  { %1303 = vrcp.f32 %v448_v15  ;;  %v475_v23 = vand.u32 2147483648, %v448_v15  ;;  %vm469_vm14 = vweird.f32 %v448_v15  ;;  %v473_v24 = vand.u32 2147483647, %v448_v15 }
 0x38a   :  { %v476_v27 = vor.u32 1.1754944e-38, %v475_v23  ;;  %vm474_vm1 = vcmp.eq.f32.partialorder %v473_v24, 8.507059e+37  ;;  %v249_v23 = vpop.f32.mrf.mxu1 }
 0x38b   :  { %v250_v24 = vadd.f32 %v249_v23, %v1652_v51 }
 0x38e   :  { %v1304_v17 = vpop.eup %1303 }
 0x38f   :  { %v465_v18 = vmul.f32 %v1304_v17, %v448_v15  ;;  %vm470_vm13 = vweird.f32 %v1304_v17 }
 0x390   :  { %vm471_vm15 = vmor %vm469_vm14, %vm470_vm13 }
 0x391   :  { %v466_v19 = vsub.f32 1.0, %v465_v18 }
 0x393   :  { %v467_v20 = vmul.f32 %v1304_v17, %v466_v19 }
 0x395   :  { %v468_v22 = vadd.f32 %v1304_v17, %v467_v20 }
 0x397   :  { %v472_v25 = vsel %vm471_vm15, %v1304_v17, %v468_v22 }
 0x398   :  { %v477_v29 = vsel %vm474_vm1, %v476_v27, %v472_v25 }
 0x3df   :  { %v494_v28 = vpop.permute.xlu2 %493 }
 0x3e0   :  { %v496_v30 = vmul.f32 %v494_v28, %v477_v29 }
 0x3e2   :  { %v499_v31 = vpack.c.bf16 %v496_v30, %v496_v30 }
 0x3e4   :  { %1204 = vmatmul.msk.bf16.vlgmr.msra.gmra.mxu2 %vm191_vm0, %v499_v31  ;;  %1205 = vmatmul.msk.bf16.vlgmr.msra.gmra.mxu3 %vm191_vm0, %v499_v31 }
 0x3e5   :  { %790 = vmatpush.bf16.msra.mxu3 %v1594_v7  ;;  %777 = vmatpush.bf16.msra.mxu2 %v1599_v21 }
 0x3e9   :  { %791 = vmatpush.bf16.msra.mxu3 %v1597_v11  ;;  %778 = vmatpush.bf16.msra.mxu2 %v1605_v32 }
 0x3ed   :  { %792 = vmatpush.bf16.msra.mxu3 %v1602_v26  ;;  %779 = vmatpush.bf16.msra.mxu2 %v1611_v41 }
 0x3f1   :  { %793 = vmatpush.bf16.msra.mxu3 %v1608_v39  ;;  %780 = vmatpush.bf16.msra.mxu2 %v1616_v47 }
 0x467   :  { %v512_v35 = vpop.f32.mrf.mxu2  ;;  %v525_v36 = vpop.f32.mrf.mxu3 }
 0x468   :  { %v530_v37 = vadd.f32 %v525_v36, %v248_v34  ;;  %v529_v45 = vadd.f32 %v512_v35, %v219_v44 }
 0x46a   :  { %1305 = vtanh.f32 %v530_v37  ;;  %v1206_v46 = vmul.f32 -1.442695, %v529_v45  ;;  %v1207_v4 = vmul.f32 -1.442695, %v530_v37  ;;  %v1255_v45 = vld [vmem:[#allocation3 + $0x10] sm:$0xff] }
 0x46b   :  { %1164 = vmatmul.msk.bf16.gmra.mxu1 %vm191_vm0, %v1255_v45  ;;  %1160 = vmatmul.msk.bf16.gmra.mxu0 %vm191_vm0, %v1255_v45 }
 0x46c   :  { %1307 = vpow2.f32 %v1206_v46  ;;  %v1256_v46 = vld [vmem:[#allocation3 + $0x18] sm:$0xff] }
 0x46f   :  { %v514_v38 = vpop.f32.mrf.mxu2  ;;  %v527_v40 = vpop.f32.mrf.mxu3 }
 0x470   :  { %v1306_v42 = vpop.eup %1305 }
 0x471   :  { %572 = vrot.lane.b32.xlu0 %v1306_v42, %s1534_s15 }
 0x472   :  { %v1308_v48 = vpop.eup %1307 }
 0x473   :  { %v537_v49 = vadd.f32 1.0, %v1308_v48 }
 0x475   :  { %1309 = vrcp.f32 %v537_v49  ;;  %v550_v56 = vand.u32 2147483648, %v537_v49  ;;  %vm544_vm3 = vweird.f32 %v537_v49  ;;  %v548_v57 = vand.u32 2147483647, %v537_v49 }
 0x477   :  { %v551_v59 = vor.u32 1.1754944e-38, %v550_v56  ;;  %vm549_vm5 = vcmp.eq.f32.partialorder %v548_v57, 8.507059e+37 }
 0x47b   :  { %v1310_v50 = vpop.eup %1309  ;;  %1165 = vmatmul.msk.bf16.gmra.mxu1 %vm191_vm0, %v1256_v46  ;;  %1161 = vmatmul.msk.bf16.gmra.mxu0 %vm191_vm0, %v1256_v46 }
 0x47c   :  { %v540_v52 = vmul.f32 %v1310_v50, %v537_v49  ;;  %vm545_vm2 = vweird.f32 %v1310_v50 }
 0x47d   :  { %vm546_vm4 = vmor %vm544_vm3, %vm545_vm2 }
 0x47e   :  { %v541_v53 = vsub.f32 1.0, %v540_v52 }
 0x480   :  { %v542_v54 = vmul.f32 %v1310_v50, %v541_v53 }
 0x482   :  { %v543_v55 = vadd.f32 %v1310_v50, %v542_v54 }
 0x484   :  { %v547_v58 = vsel %vm546_vm4, %v1310_v50, %v543_v55 }
 0x485   :  { %v552_v61 = vsel %vm549_vm5, %v551_v59, %v547_v58 }
 0x486   :  { %v570_v0 = vmul.f32 %v552_v61, %v1679_v10 }
 0x4e3   :  { %v573_v62 = vpop.permute.xlu0 %572 }
 0x4e4   :  { %v575_v63 = vmul.f32 %v573_v62, %v552_v61 }
 0x4e6   :  { %577 = vrot.lane.b32.xlu1 %v575_v63, %s1534_s15 }
 0x558   :  { %v578_v1 = vpop.permute.xlu1 %577 }
 0x559   :  { %v1700_v2 = vadd.f32 %v578_v1, %v570_v0 }
 0x55b   :  { %1311 = vtanh.f32 %v1700_v2 }
 0x55c   :  { %1313 = vpow2.f32 %v1207_v4 }
 0x561   :  { %v1312_v3 = vpop.eup %1311 }
 0x562   :  { %583 = vrot.lane.b32.xlu2 %v1312_v3, %s1534_s15  ;;  %v1314_v5 = vpop.eup %1313 }
 0x563   :  { %v538_v6 = vadd.f32 1.0, %v1314_v5 }
 0x565   :  { %1315 = vrcp.f32 %v538_v6  ;;  %v565_v10 = vand.u32 2147483648, %v538_v6  ;;  %vm559_vm7 = vweird.f32 %v538_v6  ;;  %v563_v15 = vand.u32 2147483647, %v538_v6 }
 0x567   :  { %v566_v17 = vor.u32 1.1754944e-38, %v565_v10  ;;  %vm564_vm9 = vcmp.eq.f32.partialorder %v563_v15, 8.507059e+37 }
 0x56b   :  { %v1316_v8 = vpop.eup %1315 }
 0x56c   :  { %v555_v9 = vmul.f32 %v1316_v8, %v538_v6  ;;  %vm560_vm6 = vweird.f32 %v1316_v8 }
 0x56d   :  { %vm561_vm8 = vmor %vm559_vm7, %vm560_vm6 }
 0x56e   :  { %v556_v12 = vsub.f32 1.0, %v555_v9 }
 0x570   :  { %v557_v13 = vmul.f32 %v1316_v8, %v556_v12 }
 0x572   :  { %v558_v14 = vadd.f32 %v1316_v8, %v557_v13 }
 0x574   :  { %v562_v16 = vsel %vm561_vm8, %v1316_v8, %v558_v14  ;;  %v252_v8 = vpop.f32.mrf.mxu1 }
 0x575   :  { %v567_v19 = vsel %vm564_vm9, %v566_v17, %v562_v16  ;;  %v253_v17 = vadd.f32 %v252_v8, %v1652_v51 }
 0x57c   :  { %v1731_v12 = vpop.f32.mrf.mxu1 }
 0x584   :  { %v1735_v14 = vpop.f32.mrf.mxu1 }
 0x58c   :  { %v1739_v15 = vpop.f32.mrf.mxu1 }
 0x5bc   :  { %v584_v18 = vpop.permute.xlu2 %583 }
 0x5bd   :  { %v586_v20 = vmul.f32 %v584_v18, %v567_v19 }
 0x5bf   :  { %v589_v22 = vpack.c.bf16 %v586_v20, %v586_v20 }
 0x5c1   :  { %1208 = vmatmul.msk.bf16.vlgmr.msrb.gmra.mxu2 %vm191_vm0, %v589_v22  ;;  %1209 = vmatmul.msk.bf16.vlgmr.msrb.gmra.mxu3 %vm191_vm0, %v589_v22 }
 0x5c2   :  { %970 = vmatpush.bf16.msrb.mxu3 %v1594_v7  ;;  %957 = vmatpush.bf16.msrb.mxu2 %v1599_v21 }
 0x5c6   :  { %971 = vmatpush.bf16.msrb.mxu3 %v1597_v11  ;;  %958 = vmatpush.bf16.msrb.mxu2 %v1605_v32  ;;  %v220_v32 = vpop.f32.mrf.mxu0 }
 0x5ca   :  { %972 = vmatpush.bf16.msrb.mxu3 %v1602_v26  ;;  %959 = vmatpush.bf16.msrb.mxu2 %v1611_v41  ;;  %v221_v26 = vadd.f32 %v220_v32, %v1656_v60 }
 0x5ce   :  { %973 = vmatpush.bf16.msrb.mxu3 %v1608_v39  ;;  %960 = vmatpush.bf16.msrb.mxu2 %v1616_v47  ;;  %v223_v6 = vpop.f32.mrf.mxu0 }
 0x5cf   :  { %v224_v16 = vadd.f32 %v223_v6, %v1656_v60 }
 0x5d6   :  { %v1729_v9 = vpop.f32.mrf.mxu0 }
 0x5de   :  { %v1733_v13 = vpop.f32.mrf.mxu0 }
 0x5e6   :  { %v1737_v10 = vpop.f32.mrf.mxu0 }
 0x644   :  { %v602_v25 = vpop.f32.mrf.mxu2  ;;  %v615_v27 = vpop.f32.mrf.mxu3 }
 0x645   :  { %v620_v7 = vadd.f32 %v615_v27, %v250_v24  ;;  %v619_v41 = vadd.f32 %v602_v25, %v221_v26 }
 0x647   :  { %1317 = vtanh.f32 %v620_v7  ;;  %v1210_v29 = vmul.f32 -1.442695, %v619_v41  ;;  %v1211_v53 = vmul.f32 -1.442695, %v620_v7 }
 0x649   :  { %1319 = vpow2.f32 %v1210_v29 }
 0x64c   :  { %v604_v21 = vpop.f32.mrf.mxu2  ;;  %v617_v28 = vpop.f32.mrf.mxu3 }
 0x64d   :  { %v1318_v11 = vpop.eup %1317 }
 0x64e   :  { %662 = vrot.lane.b32.xlu0 %v1318_v11, %s1534_s15 }
 0x64f   :  { %v1320_v39 = vpop.eup %1319 }
 0x650   :  { %v627_v47 = vadd.f32 1.0, %v1320_v39 }
 0x652   :  { %1321 = vrcp.f32 %v627_v47  ;;  %v640_v36 = vand.u32 2147483648, %v627_v47  ;;  %vm634_vm11 = vweird.f32 %v627_v47  ;;  %v638_v37 = vand.u32 2147483647, %v627_v47 }
 0x654   :  { %v641_v40 = vor.u32 1.1754944e-38, %v640_v36  ;;  %vm639_vm13 = vcmp.eq.f32.partialorder %v638_v37, 8.507059e+37 }
 0x658   :  { %v1322_v30 = vpop.eup %1321 }
 0x659   :  { %v630_v31 = vmul.f32 %v1322_v30, %v627_v47  ;;  %vm635_vm10 = vweird.f32 %v1322_v30 }
 0x65a   :  { %vm636_vm12 = vmor %vm634_vm11, %vm635_vm10 }
 0x65b   :  { %v631_v33 = vsub.f32 1.0, %v630_v31 }
 0x65d   :  { %v632_v34 = vmul.f32 %v1322_v30, %v631_v33 }
 0x65f   :  { %v633_v35 = vadd.f32 %v1322_v30, %v632_v34 }
 0x661   :  { %v637_v38 = vsel %vm636_vm12, %v1322_v30, %v633_v35 }
 0x662   :  { %v642_v42 = vsel %vm639_vm13, %v641_v40, %v637_v38 }
 0x663   :  { %v660_v48 = vmul.f32 %v642_v42, %v1700_v2 }
 0x6c0   :  { %v663_v43 = vpop.permute.xlu0 %662 }
 0x6c1   :  { %v665_v44 = vmul.f32 %v663_v43, %v642_v42 }
 0x6c3   :  { %667 = vrot.lane.b32.xlu1 %v665_v44, %s1534_s15 }
 0x735   :  { %v668_v49 = vpop.permute.xlu1 %667 }
 0x736   :  { %v1723_v50 = vadd.f32 %v668_v49, %v660_v48 }
 0x738   :  { %1323 = vtanh.f32 %v1723_v50 }
 0x739   :  { %1325 = vpow2.f32 %v1211_v53 }
 0x73e   :  { %v1324_v52 = vpop.eup %1323 }
 0x73f   :  { %673 = vrot.lane.b32.xlu2 %v1324_v52, %s1534_s15  ;;  %v1326_v54 = vpop.eup %1325 }
 0x740   :  { %v628_v55 = vadd.f32 1.0, %v1326_v54 }
 0x742   :  { %1327 = vrcp.f32 %v628_v55  ;;  %v655_v62 = vand.u32 2147483648, %v628_v55  ;;  %vm649_vm15 = vweird.f32 %v628_v55  ;;  %v653_v63 = vand.u32 2147483647, %v628_v55 }
 0x744   :  { %v656_v1 = vor.u32 1.1754944e-38, %v655_v62  ;;  %vm654_vm2 = vcmp.eq.f32.partialorder %v653_v63, 8.507059e+37 }
 0x748   :  { %v1328_v56 = vpop.eup %1327 }
 0x749   :  { %v645_v57 = vmul.f32 %v1328_v56, %v628_v55  ;;  %vm650_vm14 = vweird.f32 %v1328_v56 }
 0x74a   :  { %vm651_vm1 = vmor %vm649_vm15, %vm650_vm14 }
 0x74b   :  { %v646_v58 = vsub.f32 1.0, %v645_v57 }
 0x74d   :  { %v647_v59 = vmul.f32 %v1328_v56, %v646_v58 }
 0x74f   :  { %v648_v61 = vadd.f32 %v1328_v56, %v647_v59  ;;  %v255_v59 = vadd.f32 %v1731_v12, %v1652_v51 }
 0x751   :  { %v652_v0 = vsel %vm651_vm1, %v1328_v56, %v648_v61  ;;  %v226_v61 = vadd.f32 %v1729_v9, %v1656_v60 }
 0x752   :  { %v657_v3 = vsel %vm654_vm2, %v656_v1, %v652_v0 }
 0x799   :  { %v674_v2 = vpop.permute.xlu2 %673 }
 0x79a   :  { %v676_v4 = vmul.f32 %v674_v2, %v657_v3 }
 0x79c   :  { %v679_v5 = vpack.c.bf16 %v676_v4, %v676_v4 }
 0x79e   :  { %1212 = vmatmul.msk.bf16.vlgmr.msrb.gmra.mxu0 %vm191_vm0, %v679_v5  ;;  %1213 = vmatmul.msk.bf16.vlgmr.msrb.gmra.mxu1 %vm191_vm0, %v679_v5 }
 0x81b   :  { %v692_v18 = vpop.f32.mrf.mxu0  ;;  %v705_v19 = vpop.f32.mrf.mxu1 }
 0x81c   :  { %v709_v20 = vadd.f32 %v692_v18, %v224_v16  ;;  %v710_v22 = vadd.f32 %v705_v19, %v253_v17 }
 0x81e   :  { %1329 = vtanh.f32 %v710_v22  ;;  %v1214_v27 = vmul.f32 -1.442695, %v709_v20  ;;  %v1215_v40 = vmul.f32 -1.442695, %v710_v22 }
 0x820   :  { %1331 = vpow2.f32 %v1214_v27 }
 0x823   :  { %v694_v23 = vpop.f32.mrf.mxu0  ;;  %v707_v24 = vpop.f32.mrf.mxu1 }
 0x824   :  { %v1330_v25 = vpop.eup %1329 }
 0x825   :  { %752 = vrot.lane.b32.xlu0 %v1330_v25, %s1534_s15 }
 0x826   :  { %v1332_v7 = vpop.eup %1331 }
 0x827   :  { %v717_v21 = vadd.f32 1.0, %v1332_v7 }
 0x829   :  { %1333 = vrcp.f32 %v717_v21  ;;  %v730_v29 = vand.u32 2147483648, %v717_v21  ;;  %vm724_vm4 = vweird.f32 %v717_v21  ;;  %v728_v39 = vand.u32 2147483647, %v717_v21 }
 0x82b   :  { %v731_v30 = vor.u32 1.1754944e-38, %v730_v29  ;;  %vm729_vm6 = vcmp.eq.f32.partialorder %v728_v39, 8.507059e+37 }
 0x82f   :  { %v1334_v28 = vpop.eup %1333 }
 0x830   :  { %v720_v11 = vmul.f32 %v1334_v28, %v717_v21  ;;  %vm725_vm3 = vweird.f32 %v1334_v28 }
 0x831   :  { %vm726_vm5 = vmor %vm724_vm4, %vm725_vm3 }
 0x832   :  { %v721_v32 = vsub.f32 1.0, %v720_v11 }
 0x834   :  { %v722_v26 = vmul.f32 %v1334_v28, %v721_v32 }
 0x836   :  { %v723_v41 = vadd.f32 %v1334_v28, %v722_v26 }
 0x838   :  { %v727_v47 = vsel %vm726_vm5, %v1334_v28, %v723_v41 }
 0x839   :  { %v732_v33 = vsel %vm729_vm6, %v731_v30, %v727_v47 }
 0x83a   :  { %v750_v35 = vmul.f32 %v732_v33, %v1723_v50 }
 0x897   :  { %v753_v31 = vpop.permute.xlu0 %752 }
 0x898   :  { %v755_v34 = vmul.f32 %v753_v31, %v732_v33 }
 0x89a   :  { %757 = vrot.lane.b32.xlu1 %v755_v34, %s1534_s15 }
 0x90c   :  { %v758_v36 = vpop.permute.xlu1 %757 }
 0x90d   :  { %v760_v37 = vadd.f32 %v758_v36, %v750_v35 }
 0x90f   :  { %1335 = vtanh.f32 %v760_v37 }
 0x910   :  { %1337 = vpow2.f32 %v1215_v40 }
 0x915   :  { %v1336_v38 = vpop.eup %1335 }
 0x916   :  { %763 = vrot.lane.b32.xlu2 %v1336_v38, %s1534_s15  ;;  %v1338_v42 = vpop.eup %1337 }
 0x917   :  { %v718_v43 = vadd.f32 1.0, %v1338_v42 }
 0x919   :  { %1339 = vrcp.f32 %v718_v43  ;;  %v745_v52 = vand.u32 2147483648, %v718_v43  ;;  %vm739_vm8 = vweird.f32 %v718_v43  ;;  %v743_v50 = vand.u32 2147483647, %v718_v43 }
 0x91b   :  { %v746_v54 = vor.u32 1.1754944e-38, %v745_v52  ;;  %vm744_vm10 = vcmp.eq.f32.partialorder %v743_v50, 8.507059e+37 }
 0x91f   :  { %v1340_v44 = vpop.eup %1339 }
 0x920   :  { %v735_v45 = vmul.f32 %v1340_v44, %v718_v43  ;;  %vm740_vm7 = vweird.f32 %v1340_v44  ;;  %v258_v43 = vadd.f32 %v1735_v14, %v1652_v51 }
 0x921   :  { %vm741_vm9 = vmor %vm739_vm8, %vm740_vm7 }
 0x922   :  { %v736_v46 = vsub.f32 1.0, %v735_v45 }
 0x924   :  { %v737_v48 = vmul.f32 %v1340_v44, %v736_v46 }
 0x926   :  { %v738_v49 = vadd.f32 %v1340_v44, %v737_v48 }
 0x928   :  { %v742_v53 = vsel %vm741_vm9, %v1340_v44, %v738_v49  ;;  %v229_v44 = vadd.f32 %v1733_v13, %v1656_v60 }
 0x929   :  { %v747_v55 = vsel %vm744_vm10, %v746_v54, %v742_v53 }
 0x970   :  { %v764_v56 = vpop.permute.xlu2 %763 }
 0x971   :  { %v766_v57 = vmul.f32 %v764_v56, %v747_v55 }
 0x973   :  { %v769_v58 = vpack.c.bf16 %v766_v57, %v766_v57 }
 0x975   :  { %1216 = vmatmul.msk.bf16.vlgmr.msra.gmra.mxu2 %vm191_vm0, %v769_v58  ;;  %1217 = vmatmul.msk.bf16.vlgmr.msra.gmra.mxu3 %vm191_vm0, %v769_v58 }
 0x9f8   :  { %v782_v62 = vpop.f32.mrf.mxu2  ;;  %v795_v63 = vpop.f32.mrf.mxu3 }
 0x9f9   :  { %v799_v0 = vadd.f32 %v782_v62, %v226_v61  ;;  %v800_v1 = vadd.f32 %v795_v63, %v255_v59 }
 0x9fb   :  { %1341 = vtanh.f32 %v800_v1  ;;  %v1218_v5 = vmul.f32 -1.442695, %v799_v0  ;;  %v1219_v32 = vmul.f32 -1.442695, %v800_v1 }
 0x9fd   :  { %1343 = vpow2.f32 %v1218_v5 }
 0xa00   :  { %v784_v2 = vpop.f32.mrf.mxu2  ;;  %v797_v3 = vpop.f32.mrf.mxu3 }
 0xa01   :  { %v1342_v4 = vpop.eup %1341 }
 0xa02   :  { %842 = vrot.lane.b32.xlu0 %v1342_v4, %s1534_s15 }
 0xa03   :  { %v1344_v6 = vpop.eup %1343 }
 0xa04   :  { %v807_v8 = vadd.f32 1.0, %v1344_v6 }
 0xa06   :  { %1345 = vrcp.f32 %v807_v8  ;;  %v820_v19 = vand.u32 2147483648, %v807_v8  ;;  %vm814_vm12 = vweird.f32 %v807_v8  ;;  %v818_v20 = vand.u32 2147483647, %v807_v8 }
 0xa08   :  { %v821_v23 = vor.u32 1.1754944e-38, %v820_v19  ;;  %vm819_vm14 = vcmp.eq.f32.partialorder %v818_v20, 8.507059e+37 }
 0xa0c   :  { %v1346_v16 = vpop.eup %1345 }
 0xa0d   :  { %v810_v12 = vmul.f32 %v1346_v16, %v807_v8  ;;  %vm815_vm11 = vweird.f32 %v1346_v16 }
 0xa0e   :  { %vm816_vm13 = vmor %vm814_vm12, %vm815_vm11 }
 0xa0f   :  { %v811_v17 = vsub.f32 1.0, %v810_v12 }
 0xa11   :  { %v812_v18 = vmul.f32 %v1346_v16, %v811_v17 }
 0xa13   :  { %v813_v9 = vadd.f32 %v1346_v16, %v812_v18 }
 0xa15   :  { %v817_v22 = vsel %vm816_vm13, %v1346_v16, %v813_v9 }
 0xa16   :  { %v822_v24 = vsel %vm819_vm14, %v821_v23, %v817_v22 }
 0xa17   :  { %v840_v7 = vmul.f32 %v822_v24, %v760_v37 }
 0xa74   :  { %v843_v25 = vpop.permute.xlu0 %842 }
 0xa75   :  { %v845_v27 = vmul.f32 %v843_v25, %v822_v24 }
 0xa77   :  { %847 = vrot.lane.b32.xlu1 %v845_v27, %s1534_s15 }
 0xae9   :  { %v848_v21 = vpop.permute.xlu1 %847 }
 0xaea   :  { %v850_v28 = vadd.f32 %v848_v21, %v840_v7 }
 0xaec   :  { %1347 = vtanh.f32 %v850_v28 }
 0xaed   :  { %1349 = vpow2.f32 %v1219_v32  ;;  %v260_v32 = vadd.f32 %v1739_v15, %v1652_v51 }
 0xaf2   :  { %v1348_v11 = vpop.eup %1347 }
 0xaf3   :  { %853 = vrot.lane.b32.xlu2 %v1348_v11, %s1534_s15  ;;  %v1350_v26 = vpop.eup %1349 }
 0xaf4   :  { %v808_v41 = vadd.f32 1.0, %v1350_v26 }
 0xaf6   :  { %1351 = vrcp.f32 %v808_v41  ;;  %v835_v33 = vand.u32 2147483648, %v808_v41  ;;  %vm829_vm1 = vweird.f32 %v808_v41  ;;  %v833_v34 = vand.u32 2147483647, %v808_v41 }
 0xaf8   :  { %v836_v36 = vor.u32 1.1754944e-38, %v835_v33  ;;  %vm834_vm3 = vcmp.eq.f32.partialorder %v833_v34, 8.507059e+37 }
 0xafc   :  { %v1352_v29 = vpop.eup %1351 }
 0xafd   :  { %v825_v39 = vmul.f32 %v1352_v29, %v808_v41  ;;  %vm830_vm15 = vweird.f32 %v1352_v29 }
 0xafe   :  { %vm831_vm2 = vmor %vm829_vm1, %vm830_vm15 }
 0xaff   :  { %v826_v47 = vsub.f32 1.0, %v825_v39 }
 0xb01   :  { %v827_v30 = vmul.f32 %v1352_v29, %v826_v47 }
 0xb03   :  { %v828_v31 = vadd.f32 %v1352_v29, %v827_v30 }
 0xb05   :  { %v832_v35 = vsel %vm831_vm2, %v1352_v29, %v828_v31  ;;  %v231_v31 = vadd.f32 %v1737_v10, %v1656_v60 }
 0xb06   :  { %v837_v38 = vsel %vm834_vm3, %v836_v36, %v832_v35 }
 0xb4d   :  { %v854_v37 = vpop.permute.xlu2 %853 }
 0xb4e   :  { %v856_v40 = vmul.f32 %v854_v37, %v837_v38 }
 0xb50   :  { %v859_v42 = vpack.c.bf16 %v856_v40, %v856_v40 }
 0xb52   :  { %1220 = vmatmul.msk.bf16.vlgmr.msra.gmra.mxu0 %vm191_vm0, %v859_v42  ;;  %1221 = vmatmul.msk.bf16.vlgmr.msra.gmra.mxu1 %vm191_vm0, %v859_v42 }
 0xbcf   :  { %v872_v45 = vpop.f32.mrf.mxu0  ;;  %v885_v46 = vpop.f32.mrf.mxu1 }
 0xbd0   :  { %v889_v48 = vadd.f32 %v872_v45, %v229_v44  ;;  %v890_v49 = vadd.f32 %v885_v46, %v258_v43 }
 0xbd2   :  { %1353 = vtanh.f32 %v890_v49  ;;  %v1222_v54 = vmul.f32 -1.442695, %v889_v48  ;;  %v1223_v16 = vmul.f32 -1.442695, %v890_v49  ;;  %v1268_v48 = vld [vmem:[#allocation11 + $0x18] sm:$0xff]  ;;  %v1267_v49 = vld [vmem:[#allocation11 + $0x10] sm:$0xff] }
 0xbd3   :  { %1081 = vmatpush.bf16.msrb.mxu0 %v1268_v48 }
 0xbd4   :  { %1355 = vpow2.f32 %v1222_v54 }
 0xbd7   :  { %v874_v52 = vpop.f32.mrf.mxu0  ;;  %v887_v50 = vpop.f32.mrf.mxu1  ;;  %1082 = vmatpush.bf16.msrb.mxu0 %v1267_v49 }
 0xbd8   :  { %v1354_v53 = vpop.eup %1353  ;;  %v1266_v52 = vld [vmem:[#allocation11 + $0x8] sm:$0xff] }
 0xbd9   :  { %932 = vrot.lane.b32.xlu0 %v1354_v53, %s1534_s15 }
 0xbda   :  { %v1356_v55 = vpop.eup %1355 }
 0xbdb   :  { %v897_v56 = vadd.f32 1.0, %v1356_v55  ;;  %1083 = vmatpush.bf16.msrb.mxu0 %v1266_v52 }
 0xbdd   :  { %1357 = vrcp.f32 %v897_v56  ;;  %v910_v61 = vand.u32 2147483648, %v897_v56  ;;  %vm904_vm5 = vweird.f32 %v897_v56  ;;  %v908_v62 = vand.u32 2147483647, %v897_v56 }
 0xbdf   :  { %v911_v0 = vor.u32 1.1754944e-38, %v910_v61  ;;  %vm909_vm7 = vcmp.eq.f32.partialorder %v908_v62, 8.507059e+37 }
 0xbe3   :  { %v1358_v57 = vpop.eup %1357 }
 0xbe4   :  { %v900_v14 = vmul.f32 %v1358_v57, %v897_v56  ;;  %vm905_vm4 = vweird.f32 %v1358_v57 }
 0xbe5   :  { %vm906_vm6 = vmor %vm904_vm5, %vm905_vm4 }
 0xbe6   :  { %v901_v58 = vsub.f32 1.0, %v900_v14 }
 0xbe8   :  { %v902_v59 = vmul.f32 %v1358_v57, %v901_v58  ;;  %v1265_v58 = vld [vmem:[#allocation11] sm:$0xff] }
 0xbe9   :  { %1084 = vmatpush.bf16.msrb.mxu0 %v1265_v58 }
 0xbea   :  { %v903_v13 = vadd.f32 %v1358_v57, %v902_v59 }
 0xbec   :  { %v907_v63 = vsel %vm906_vm6, %v1358_v57, %v903_v13 }
 0xbed   :  { %v912_v2 = vsel %vm909_vm7, %v911_v0, %v907_v63 }
 0xbee   :  { %v930_v4 = vmul.f32 %v912_v2, %v850_v28 }
 0xc4b   :  { %v933_v1 = vpop.permute.xlu0 %932 }
 0xc4c   :  { %v935_v3 = vmul.f32 %v933_v1, %v912_v2 }
 0xc4e   :  { %937 = vrot.lane.b32.xlu1 %v935_v3, %s1534_s15 }
 0xcc0   :  { %v938_v5 = vpop.permute.xlu1 %937 }
 0xcc1   :  { %v1764_v6 = vadd.f32 %v938_v5, %v930_v4 }
 0xcc3   :  { %1359 = vtanh.f32 %v1764_v6 }
 0xcc4   :  { %1361 = vpow2.f32 %v1223_v16  ;;  %v1280_v16 = vld [vmem:[%s1790_s5] ss:$0 sm:$0xff] }
 0xcc9   :  { %v1360_v8 = vpop.eup %1359 }
 0xcca   :  { %943 = vrot.lane.b32.xlu2 %v1360_v8, %s1534_s15  ;;  %v1362_v12 = vpop.eup %1361 }
 0xccb   :  { %v898_v17 = vadd.f32 1.0, %v1362_v12 }
 0xccd   :  { %1363 = vrcp.f32 %v898_v17  ;;  %v925_v23 = vand.u32 2147483648, %v898_v17  ;;  %vm919_vm9 = vweird.f32 %v898_v17  ;;  %v923_v24 = vand.u32 2147483647, %v898_v17 }
 0xccf   :  { %v926_v27 = vor.u32 1.1754944e-38, %v925_v23  ;;  %vm924_vm11 = vcmp.eq.f32.partialorder %v923_v24, 8.507059e+37 }
 0xcd3   :  { %v1364_v18 = vpop.eup %1363 }
 0xcd4   :  { %v915_v9 = vmul.f32 %v1364_v18, %v898_v17  ;;  %vm920_vm8 = vweird.f32 %v1364_v18 }
 0xcd5   :  { %vm921_vm10 = vmor %vm919_vm9, %vm920_vm8 }
 0xcd6   :  { %v916_v19 = vsub.f32 1.0, %v915_v9 }
 0xcd8   :  { %v917_v20 = vmul.f32 %v1364_v18, %v916_v19 }
 0xcda   :  { %v918_v22 = vadd.f32 %v1364_v18, %v917_v20 }
 0xcdc   :  { %v922_v25 = vsel %vm921_vm10, %v1364_v18, %v918_v22 }
 0xcdd   :  { %v927_v7 = vsel %vm924_vm11, %v926_v27, %v922_v25 }
 0xd24   :  { %v944_v21 = vpop.permute.xlu2 %943 }
 0xd25   :  { %v946_v28 = vmul.f32 %v944_v21, %v927_v7 }
 0xd27   :  { %v949_v11 = vpack.c.bf16 %v946_v28, %v946_v28 }
 0xd29   :  { %1224 = vmatmul.msk.bf16.vlgmr.msrb.gmra.mxu2 %vm191_vm0, %v949_v11  ;;  %1225 = vmatmul.msk.bf16.vlgmr.msrb.gmra.mxu3 %vm191_vm0, %v949_v11 }
 0xdac   :  { %v962_v26 = vpop.f32.mrf.mxu2  ;;  %v975_v41 = vpop.f32.mrf.mxu3 }
 0xdad   :  { %v980_v29 = vadd.f32 %v975_v41, %v260_v32  ;;  %v979_v33 = vadd.f32 %v962_v26, %v231_v31 }
 0xdaf   :  { %1365 = vtanh.f32 %v980_v29  ;;  %v1226_v34 = vmul.f32 -1.442695, %v979_v33  ;;  %v1227_v56 = vmul.f32 -1.442695, %v980_v29 }
 0xdb1   :  { %1367 = vpow2.f32 %v1226_v34 }
 0xdb4   :  { %v964_v39 = vpop.f32.mrf.mxu2  ;;  %v977_v47 = vpop.f32.mrf.mxu3 }
 0xdb5   :  { %v1366_v30 = vpop.eup %1365 }
 0xdb6   :  { %1022 = vrot.lane.b32.xlu0 %v1366_v30, %s1534_s15 }
 0xdb7   :  { %v1368_v35 = vpop.eup %1367 }
 0xdb8   :  { %v987_v36 = vadd.f32 1.0, %v1368_v35 }
 0xdba   :  { %1369 = vrcp.f32 %v987_v36  ;;  %v1000_v42 = vand.u32 2147483648, %v987_v36  ;;  %vm994_vm13 = vweird.f32 %v987_v36  ;;  %v998_v43 = vand.u32 2147483647, %v987_v36 }
 0xdbc   :  { %v1001_v45 = vor.u32 1.1754944e-38, %v1000_v42  ;;  %vm999_vm15 = vcmp.eq.f32.partialorder %v998_v43, 8.507059e+37 }
 0xdc0   :  { %v1370_v37 = vpop.eup %1369 }
 0xdc1   :  { %v990_v51 = vmul.f32 %v1370_v37, %v987_v36  ;;  %vm995_vm12 = vweird.f32 %v1370_v37 }
 0xdc2   :  { %vm996_vm14 = vmor %vm994_vm13, %vm995_vm12 }
 0xdc3   :  { %v991_v15 = vsub.f32 1.0, %v990_v51 }
 0xdc5   :  { %v992_v38 = vmul.f32 %v1370_v37, %v991_v15 }
 0xdc7   :  { %v993_v40 = vadd.f32 %v1370_v37, %v992_v38 }
 0xdc9   :  { %v997_v44 = vsel %vm996_vm14, %v1370_v37, %v993_v40 }
 0xdca   :  { %v1002_v60 = vsel %vm999_vm15, %v1001_v45, %v997_v44 }
 0xdcb   :  { %v1020_v50 = vmul.f32 %v1002_v60, %v1764_v6 }
 0xe28   :  { %v1023_v10 = vpop.permute.xlu0 %1022 }
 0xe29   :  { %v1025_v46 = vmul.f32 %v1023_v10, %v1002_v60 }
 0xe2b   :  { %1027 = vrot.lane.b32.xlu1 %v1025_v46, %s1534_s15 }
 0xe9d   :  { %v1028_v53 = vpop.permute.xlu1 %1027 }
 0xe9e   :  { %v1030_v54 = vadd.f32 %v1028_v53, %v1020_v50 }
 0xea0   :  { %1371 = vtanh.f32 %v1030_v54 }
 0xea1   :  { %1373 = vpow2.f32 %v1227_v56 }
 0xea6   :  { %v1372_v55 = vpop.eup %1371 }
 0xea7   :  { %1033 = vrot.lane.b32.xlu2 %v1372_v55, %s1534_s15  ;;  %v1374_v57 = vpop.eup %1373 }
 0xea8   :  { %v988_v14 = vadd.f32 1.0, %v1374_v57 }
 0xeaa   :  { %1375 = vrcp.f32 %v988_v14  ;;  %v1015_v0 = vand.u32 2147483648, %v988_v14  ;;  %vm1009_vm2 = vweird.f32 %v988_v14  ;;  %v1013_v1 = vand.u32 2147483647, %v988_v14 }
 0xeac   :  { %v1016_v3 = vor.u32 1.1754944e-38, %v1015_v0  ;;  %vm1014_vm4 = vcmp.eq.f32.partialorder %v1013_v1, 8.507059e+37 }
 0xeb0   :  { %v1376_v59 = vpop.eup %1375 }
 0xeb1   :  { %v1005_v13 = vmul.f32 %v1376_v59, %v988_v14  ;;  %vm1010_vm1 = vweird.f32 %v1376_v59 }
 0xeb2   :  { %vm1011_vm3 = vmor %vm1009_vm2, %vm1010_vm1 }
 0xeb3   :  { %v1006_v61 = vsub.f32 1.0, %v1005_v13 }
 0xeb5   :  { %v1007_v62 = vmul.f32 %v1376_v59, %v1006_v61 }
 0xeb7   :  { %v1008_v63 = vadd.f32 %v1376_v59, %v1007_v62 }
 0xeb9   :  { %v1012_v2 = vsel %vm1011_vm3, %v1376_v59, %v1008_v63 }
 0xeba   :  { %v1017_v5 = vsel %vm1014_vm4, %v1016_v3, %v1012_v2 }
 0xf01   :  { %v1034_v4 = vpop.permute.xlu2 %1033 }
 0xf02   :  { %v1036_v6 = vmul.f32 %v1034_v4, %v1017_v5 }
 0xf04   :  { %v1037_v8 = vpack.c.bf16 %v1036_v6, %v1036_v6 }
 0xf06   :  { %1244 = vmatmul.msk.bf16.vlgmr.msrb.gmra.mxu0 %vm191_vm0, %v1037_v8 }
 0xf83   :  { %v1086_v12 = vpop.f32.mrf.mxu0 }
 0xf84   :  { %v1087_v17 = vadd.f32 %v1280_v16, %v1086_v12 }
 0xf86   :  { %1090 = vst [vmem:[#allocation12] sm:$0xff] %v1087_v17 }
 0xf87   :  { %1101 = dma.vmem_to_hbm [thread:$0]  %s1097_s24, 128, %s1099_s27, [#allocation5]  }
 0xf8b   :  { %v1088_v18 = vpop.f32.mrf.mxu0 }
 0xf8c   :  { %1527 = dma.done.wait [#allocation5], 128  }
 0xf8d   :  { %1528 = vsyncadd [#allocation5], 4294967168 }
 0xf8e   :  { %1106 = vsyncpa [#allocation4], 1 }
 0xf8f   :  { %1107 = vsyncpa [#allocation7], 1 }
 0xf90   :  { %1108 = vsyncpa [#allocation10], 1 }
 0xf91   :  { %1109 = vsyncpa [#allocation5], 1 }

</bundles_post_ra>
